<compile_context>
chip_gen: v7x
topology: tpu7x:2x2x1
jax: 0.10.0
libtpu: 0.0.40
codegen_flags: <defaults>
</compile_context>

<pallas_src>
import functools
import math

import jax
import jax.numpy as jnp
from jax.experimental import pallas as pl
from jax.experimental.pallas import tpu as pltpu


# ----------------------------------------------------------------------------
# helpers
# ----------------------------------------------------------------------------
def _round_up(x, m):
    return ((x + m - 1) // m) * m


def _pick_row_tile(rows, in_width, out_width=0, weight_bytes=0,
                   max_block_bytes=4 * 1024 * 1024, max_rows=512,
                   min_programs=2):
    """Sublane-aligned (multiple of 8) row tile.

    Budget: one f32 input block + one f32 output block stays under
    ~max_block_bytes minus the (double-buffered) weight block, so the pipeline
    fits the scoped-VMEM default on every generation (v5e 16 MiB / v6e 32 MiB /
    v7x 32 MiB of 64 MiB physical).  When there are enough rows we also cap the
    tile so the grid has >= min_programs steps ("parallel" axis => both v7x
    TensorCores get work)."""
    width = max(in_width + out_width, 1)
    budget = max(max_block_bytes - 2 * weight_bytes, 256 * 1024)
    cap = (budget // (width * 4)) // 8 * 8
    cap = max(8, min(max_rows, cap))
    if min_programs > 1 and rows >= 8 * min_programs:
        cap = min(cap, _round_up(-(-rows // min_programs), 8))
    return min(cap, _round_up(rows, 8))


def _flatten_rows(x):
    d = x.shape[-1]
    x2 = x.reshape(-1, d)
    return x2, x2.shape[0], d


def _pad_rows(x2, rows, rt):
    rows_p = _round_up(rows, rt)
    if rows_p != rows:
        x2 = jnp.pad(x2, ((0, rows_p - rows), (0, 0)))
    return x2, rows_p


# ----------------------------------------------------------------------------
# Standalone LayerNorm kernel (exact torch.std semantics; used for the final
# encoder/decoder norms and the tight unit test — no matmul, no bf16).
# ----------------------------------------------------------------------------
def _layer_norm_kernel(x_ref, g_ref, b_ref, o_ref, *, eps):
    x = x_ref[...].astype(jnp.float32)                 # (rt, D)
    d = x.shape[-1]
    mean = jnp.sum(x, axis=-1, keepdims=True) * (1.0 / d)
    xc = x - mean
    var = jnp.sum(xc * xc, axis=-1, keepdims=True) * (1.0 / (d - 1))  # unbiased
    inv = pl.reciprocal(jnp.sqrt(var) + eps, approx=False)            # EUP
    o_ref[...] = (xc * inv * g_ref[...] + b_ref[...]).astype(o_ref.dtype)


def layer_norm_pallas(x, gamma, beta, eps=1e-6):
    """LayerNorm over the last dim of x (any leading shape); gamma/beta: (D,)."""
    orig_shape = x.shape
    x2, rows, d = _flatten_rows(x)
    rt = _pick_row_tile(rows, d, d)
    x2, rows_p = _pad_rows(x2, rows, rt)

    out = pl.pallas_call(
        functools.partial(_layer_norm_kernel, eps=eps),
        out_shape=jax.ShapeDtypeStruct((rows_p, d), x.dtype),
        grid=(rows_p // rt,),
        in_specs=[
            pl.BlockSpec((rt, d), lambda i: (i, 0)),
            pl.BlockSpec((1, d), lambda i: (0, 0)),
            pl.BlockSpec((1, d), lambda i: (0, 0)),
        ],
        out_specs=pl.BlockSpec((rt, d), lambda i: (i, 0)),
        compiler_params=pltpu.CompilerParams(dimension_semantics=("parallel",)),
    )(x2, gamma.reshape(1, d).astype(jnp.float32),
      beta.reshape(1, d).astype(jnp.float32))

    if rows_p != rows:
        out = out[:rows]
    return out.reshape(orig_shape)


# ----------------------------------------------------------------------------
# Linear (+ optional fused leaky_relu), bf16 MXU operands / f32 accumulate
# ----------------------------------------------------------------------------
def _linear_kernel(x_ref, w_ref, b_ref, o_ref, *, activation):
    x = x_ref[...].astype(jnp.bfloat16)
    w = w_ref[...].astype(jnp.bfloat16)
    y = jnp.dot(x, w, preferred_element_type=jnp.float32)
    y = y + b_ref[...].astype(jnp.float32)             # epilogue stays f32
    if activation == "leaky_relu":
        y = jnp.where(y >= 0, y, 0.2 * y)
    o_ref[...] = y.astype(o_ref.dtype)


def linear_pallas(x, w, b, activation=None):
    """x: (..., K) @ w: (K, N) + b: (N,). Leading dims flattened into row tiles."""
    orig_shape = x.shape
    x2, rows, k = _flatten_rows(x)
    n = w.shape[1]
    rt = _pick_row_tile(rows, k, n, weight_bytes=k * n * 4)
    x2, rows_p = _pad_rows(x2, rows, rt)

    out = pl.pallas_call(
        functools.partial(_linear_kernel, activation=activation),
        out_shape=jax.ShapeDtypeStruct((rows_p, n), x.dtype),
        grid=(rows_p // rt,),
        in_specs=[
            pl.BlockSpec((rt, k), lambda i: (i, 0)),
            pl.BlockSpec((k, n), lambda i: (0, 0)),
            pl.BlockSpec((1, n), lambda i: (0, 0)),
        ],
        out_specs=pl.BlockSpec((rt, n), lambda i: (i, 0)),
        compiler_params=pltpu.CompilerParams(dimension_semantics=("parallel",)),
    )(x2, w, b.reshape(1, n))

    if rows_p != rows:
        out = out[:rows]
    return out.reshape(orig_shape[:-1] + (n,))


# ----------------------------------------------------------------------------
# Fused LayerNorm -> Linear (+ optional leaky_relu).  LN math (VPU/XLU) hides
# under the MXU matmul; the normalized activation never hits HBM.
# ----------------------------------------------------------------------------
def _ln_linear_kernel(x_ref, g_ref, beta_ref, w_ref, b_ref, o_ref,
                      *, eps, activation):
    x = x_ref[...].astype(jnp.float32)                 # (rt, K)
    d = x.shape[-1]
    mean = jnp.sum(x, axis=-1, keepdims=True) * (1.0 / d)
    xc = x - mean
    var = jnp.sum(xc * xc, axis=-1, keepdims=True) * (1.0 / (d - 1))
    inv = pl.reciprocal(jnp.sqrt(var) + eps, approx=False)
    y = xc * inv * g_ref[...] + beta_ref[...]          # LN output (f32)
    w = w_ref[...].astype(jnp.bfloat16)
    out = jnp.dot(y.astype(jnp.bfloat16), w, preferred_element_type=jnp.float32)
    out = out + b_ref[...].astype(jnp.float32)
    if activation == "leaky_relu":
        out = jnp.where(out >= 0, out, 0.2 * out)
    o_ref[...] = out.astype(o_ref.dtype)


def ln_linear_pallas(x, gamma, beta, w, b, activation=None, eps=1e-6):
    """leaky_relu?( LayerNorm(x) @ w + b ) with LN over the last dim of x."""
    orig_shape = x.shape
    x2, rows, k = _flatten_rows(x)
    n = w.shape[1]
    rt = _pick_row_tile(rows, k, n, weight_bytes=k * n * 4)
    x2, rows_p = _pad_rows(x2, rows, rt)

    out = pl.pallas_call(
        functools.partial(_ln_linear_kernel, eps=eps, activation=activation),
        out_shape=jax.ShapeDtypeStruct((rows_p, n), x.dtype),
        grid=(rows_p // rt,),
        in_specs=[
            pl.BlockSpec((rt, k), lambda i: (i, 0)),
            pl.BlockSpec((1, k), lambda i: (0, 0)),
            pl.BlockSpec((1, k), lambda i: (0, 0)),
            pl.BlockSpec((k, n), lambda i: (0, 0)),
            pl.BlockSpec((1, n), lambda i: (0, 0)),
        ],
        out_specs=pl.BlockSpec((rt, n), lambda i: (i, 0)),
        compiler_params=pltpu.CompilerParams(dimension_semantics=("parallel",)),
    )(x2, gamma.reshape(1, k).astype(jnp.float32),
      beta.reshape(1, k).astype(jnp.float32), w, b.reshape(1, n))

    if rows_p != rows:
        out = out[:rows]
    return out.reshape(orig_shape[:-1] + (n,))


# ----------------------------------------------------------------------------
# Multi-head attention kernels.  Grid over batch only; heads are split with
# static lane slices inside the kernel and the output is written lane-dense
# as (1, Sq, H*dk).  The 1/sqrt(dk) scale is already baked into the Q weights.
# ----------------------------------------------------------------------------
def _mha_core(q, k, v, n_heads):
    """q: (Sq, D), k/v: (Sk, D) in f32 (q pre-scaled).  Returns (Sq, D) f32."""
    d = q.shape[-1]
    dk = d // n_heads
    outs = []
    for h in range(n_heads):                     # small, unrolled at trace time
        sl = slice(h * dk, (h + 1) * dk)
        qh = q[:, sl].astype(jnp.bfloat16)
        kh = k[:, sl].astype(jnp.bfloat16)
        vh = v[:, sl].astype(jnp.bfloat16)
        s = jax.lax.dot_general(qh, kh, (((1,), (1,)), ((), ())),
                                preferred_element_type=jnp.float32)   # (Sq,Sk)
        m = jnp.max(s, axis=-1, keepdims=True)
        p = jnp.exp(s - m)
        denom = jnp.sum(p, axis=-1, keepdims=True)
        p = p * pl.reciprocal(denom, approx=True)                     # EUP
        outs.append(jnp.dot(p.astype(jnp.bfloat16), vh,
                            preferred_element_type=jnp.float32))
    return jnp.concatenate(outs, axis=-1)        # lane-dense (Sq, D)


def _self_attn_kernel(qkv_ref, o_ref, *, n_heads):
    qkv = qkv_ref[...][0].astype(jnp.float32)    # (S, 3D)
    d = qkv.shape[-1] // 3
    q = qkv[:, :d]
    k = qkv[:, d:2 * d]
    v = qkv[:, 2 * d:]
    o_ref[...] = _mha_core(q, k, v, n_heads)[None].astype(o_ref.dtype)


def _cross_attn_kernel(q_ref, kv_ref, o_ref, *, n_heads):
    q = q_ref[...][0].astype(jnp.float32)        # (Sq, D)
    kv = kv_ref[...][0].astype(jnp.float32)      # (Sk, 2D)
    d = q.shape[-1]
    k = kv[:, :d]
    v = kv[:, d:]
    o_ref[...] = _mha_core(q, k, v, n_heads)[None].astype(o_ref.dtype)


def attention_self_pallas(qkv, n_heads):
    """qkv: (B, S, 3D) fused projection -> (B, S, D)."""
    b, s, d3 = qkv.shape
    d = d3 // 3
    return pl.pallas_call(
        functools.partial(_self_attn_kernel, n_heads=n_heads),
        out_shape=jax.ShapeDtypeStruct((b, s, d), qkv.dtype),
        grid=(b,),
        in_specs=[pl.BlockSpec((1, s, d3), lambda i: (i, 0, 0))],
        out_specs=pl.BlockSpec((1, s, d), lambda i: (i, 0, 0)),
        compiler_params=pltpu.CompilerParams(dimension_semantics=("parallel",)),
    )(qkv)


def attention_cross_pallas(q, kv, n_heads):
    """q: (B, Sq, D), kv: (B, Sk, 2D) fused K|V projection -> (B, Sq, D)."""
    b, sq, d = q.shape
    sk = kv.shape[1]
    return pl.pallas_call(
        functools.partial(_cross_attn_kernel, n_heads=n_heads),
        out_shape=jax.ShapeDtypeStruct((b, sq, d), q.dtype),
        grid=(b,),
        in_specs=[pl.BlockSpec((1, sq, d), lambda i: (i, 0, 0)),
                  pl.BlockSpec((1, sk, 2 * d), lambda i: (i, 0, 0))],
        out_specs=pl.BlockSpec((1, sq, d), lambda i: (i, 0, 0)),
        compiler_params=pltpu.CompilerParams(dimension_semantics=("parallel",)),
    )(q, kv)


# ----------------------------------------------------------------------------
# Pallas model composition (fused params)
# ----------------------------------------------------------------------------
def mha_self_pallas(x, norm_g, norm_b, p, n_heads):
    qkv = ln_linear_pallas(x, norm_g, norm_b, p["wqkv"], p["bqkv"])
    a = attention_self_pallas(qkv, n_heads)
    return linear_pallas(a, p["wo"], p["bo"])


def mha_cross_pallas(x, memory, norm_g, norm_b, p, n_heads):
    q = ln_linear_pallas(x, norm_g, norm_b, p["wq"], p["bq"])
    kv = linear_pallas(memory, p["wkv"], p["bkv"])
    a = attention_cross_pallas(q, kv, n_heads)
    return linear_pallas(a, p["wo"], p["bo"])


def ffn_pallas(x, norm_g, norm_b, p):
    hid = ln_linear_pallas(x, norm_g, norm_b, p["w1"], p["b1"],
                           activation="leaky_relu")   # leaky_relu(0.2)
    return linear_pallas(hid, p["w2"], p["b2"])


def encoder_layer_pallas(x, lp, n_heads):
    x = x + mha_self_pallas(x, lp["norm0_g"], lp["norm0_b"],
                            lp["self_attn"], n_heads)
    x = x + ffn_pallas(x, lp["norm1_g"], lp["norm1_b"], lp["ff"])
    return x


def decoder_layer_pallas(x, memory, lp, n_heads):
    x = x + mha_self_pallas(x, lp["norm0_g"], lp["norm0_b"],
                            lp["self_attn"], n_heads)
    x = x + mha_cross_pallas(x, memory, lp["norm1_g"], lp["norm1_b"],
                             lp["src_attn"], n_heads)
    x = x + ffn_pallas(x, lp["norm2_g"], lp["norm2_b"], lp["ff"])
    return x


def encoder_pallas(x, p, n_heads):
    for lp in p["layers"]:
        x = encoder_layer_pallas(x, lp, n_heads)
    return layer_norm_pallas(x, p["norm_g"], p["norm_b"])


def decoder_pallas(x, memory, p, n_heads):
    for lp in p["layers"]:
        x = decoder_layer_pallas(x, memory, lp, n_heads)
    return layer_norm_pallas(x, p["norm_g"], p["norm_b"])


def encoder_decoder_pallas(enc_in, dec_in, params, n_heads):
    memory = encoder_pallas(enc_in, params["encoder"], n_heads)
    return decoder_pallas(dec_in, memory, params["decoder"], n_heads)


def transformer_forward_pallas(src, tgt, params, n_heads):
    """src, tgt: [B, n_emb_dims, n_points] -> (src_embedding, tgt_embedding).

    The two independent encoder_decoder passes are batched along the batch dim
    so every kernel sees 2x the rows (half the launches, >=2 grid programs)."""
    b = src.shape[0]
    src_t = jnp.transpose(src, (0, 2, 1))
    tgt_t = jnp.transpose(tgt, (0, 2, 1))
    enc_in = jnp.concatenate([src_t, tgt_t], axis=0)
    dec_in = jnp.concatenate([tgt_t, src_t], axis=0)
    out = encoder_decoder_pallas(enc_in, dec_in, params, n_heads)
    tgt_embedding = jnp.transpose(out[:b], (0, 2, 1))
    src_embedding = jnp.transpose(out[b:], (0, 2, 1))
    return src_embedding, tgt_embedding


# ----------------------------------------------------------------------------
# Pure-JAX reference (mirrors the PyTorch module structure, unfused params)
# ----------------------------------------------------------------------------
def layer_norm_ref(x, gamma, beta, eps=1e-6):
    x32 = x.astype(jnp.float32)
    mean = jnp.mean(x32, axis=-1, keepdims=True)
    var = jnp.sum((x32 - mean) ** 2, axis=-1, keepdims=True) / (x.shape[-1] - 1)
    std = jnp.sqrt(var)
    return (gamma * (x32 - mean) / (std + eps) + beta).astype(x.dtype)


def linear_ref(x, w, b, activation=None):
    y = jnp.dot(x, w, precision=jax.lax.Precision.HIGHEST) + b
    if activation == "leaky_relu":
        y = jnp.where(y >= 0, y, 0.2 * y)
    return y


def mha_ref(q, k, v, p, h):
    b, sq, d = q.shape
    dk = d // h

    def split(x):
        return x.reshape(x.shape[0], x.shape[1], h, dk).transpose(0, 2, 1, 3)

    qh = split(linear_ref(q, p["wq"], p["bq"]))
    kh = split(linear_ref(k, p["wk"], p["bk"]))
    vh = split(linear_ref(v, p["wv"], p["bv"]))
    s = jnp.einsum("bhqd,bhkd->bhqk", qh, kh,
                   precision=jax.lax.Precision.HIGHEST) / math.sqrt(dk)
    pa = jax.nn.softmax(s, axis=-1)
    oh = jnp.einsum("bhqk,bhkd->bhqd", pa, vh,
                    precision=jax.lax.Precision.HIGHEST)
    o = oh.transpose(0, 2, 1, 3).reshape(b, sq, d)
    return linear_ref(o, p["wo"], p["bo"])


def ffn_ref(x, p):
    hid = linear_ref(x, p["w1"], p["b1"], activation="leaky_relu")
    return linear_ref(hid, p["w2"], p["b2"])


def encoder_layer_ref(x, lp, n_heads):
    y = layer_norm_ref(x, lp["norm0_g"], lp["norm0_b"])
    x = x + mha_ref(y, y, y, lp["self_attn"], n_heads)
    y = layer_norm_ref(x, lp["norm1_g"], lp["norm1_b"])
    x = x + ffn_ref(y, lp["ff"])
    return x


def decoder_layer_ref(x, memory, lp, n_heads):
    y = layer_norm_ref(x, lp["norm0_g"], lp["norm0_b"])
    x = x + mha_ref(y, y, y, lp["self_attn"], n_heads)
    y = layer_norm_ref(x, lp["norm1_g"], lp["norm1_b"])
    x = x + mha_ref(y, memory, memory, lp["src_attn"], n_heads)
    y = layer_norm_ref(x, lp["norm2_g"], lp["norm2_b"])
    x = x + ffn_ref(y, lp["ff"])
    return x


def encoder_decoder_ref(src_seq, tgt_seq, params, n_heads):
    x = src_seq
    for lp in params["encoder"]["layers"]:
        x = encoder_layer_ref(x, lp, n_heads)
    memory = layer_norm_ref(x, params["encoder"]["norm_g"],
                            params["encoder"]["norm_b"])
    x = tgt_seq
    for lp in params["decoder"]["layers"]:
        x = decoder_layer_ref(x, memory, lp, n_heads)
    return layer_norm_ref(x, params["decoder"]["norm_g"],
                          params["decoder"]["norm_b"])


def transformer_forward_ref(src, tgt, params, n_heads):
    src_t = jnp.transpose(src, (0, 2, 1))
    tgt_t = jnp.transpose(tgt, (0, 2, 1))
    tgt_embedding = jnp.transpose(
        encoder_decoder_ref(src_t, tgt_t, params, n_heads), (0, 2, 1))
    src_embedding = jnp.transpose(
        encoder_decoder_ref(tgt_t, src_t, params, n_heads), (0, 2, 1))
    return src_embedding, tgt_embedding


# ----------------------------------------------------------------------------
# Deterministic parameter construction (weights stored as (in, out) = W^T)
# and fusion for the Pallas path (QKV / KV concat, 1/sqrt(dk) baked into Q).
# ----------------------------------------------------------------------------
def init_params(key, d_model, d_ff, n_blocks):
    def init_linear(k, d_in, d_out):
        k1, k2 = jax.random.split(k)
        bound = 1.0 / math.sqrt(d_in)
        w = jax.random.uniform(k1, (d_in, d_out), jnp.float32, -bound, bound)
        b = jax.random.uniform(k2, (d_out,), jnp.float32, -bound, bound)
        return w, b

    def init_attn(k):
        ks = jax.random.split(k, 4)
        p = {}
        for name, kk in zip(("q", "k", "v", "o"), ks):
            w, b = init_linear(kk, d_model, d_model)
            p["w" + name] = w
            p["b" + name] = b
        return p

    def init_ff(k):
        k1, k2 = jax.random.split(k)
        w1, b1 = init_linear(k1, d_model, d_ff)
        w2, b2 = init_linear(k2, d_ff, d_model)
        return {"w1": w1, "b1": b1, "w2": w2, "b2": b2}

    def norm():
        return (jnp.ones((d_model,), jnp.float32),
                jnp.zeros((d_model,), jnp.float32))

    kit = iter(jax.random.split(key, 8 * n_blocks + 2))

    enc_layers = []
    for _ in range(n_blocks):
        g0, b0 = norm()
        g1, b1 = norm()
        enc_layers.append({"self_attn": init_attn(next(kit)),
                           "ff": init_ff(next(kit)),
                           "norm0_g": g0, "norm0_b": b0,
                           "norm1_g": g1, "norm1_b": b1})
    ge, be = norm()

    dec_layers = []
    for _ in range(n_blocks):
        g0, b0 = norm()
        g1, b1 = norm()
        g2, b2 = norm()
        dec_layers.append({"self_attn": init_attn(next(kit)),
                           "src_attn": init_attn(next(kit)),
                           "ff": init_ff(next(kit)),
                           "norm0_g": g0, "norm0_b": b0,
                           "norm1_g": g1, "norm1_b": b1,
                           "norm2_g": g2, "norm2_b": b2})
    gd, bd = norm()

    return {"encoder": {"layers": enc_layers, "norm_g": ge, "norm_b": be},
            "decoder": {"layers": dec_layers, "norm_g": gd, "norm_b": bd}}


def fuse_params(params, n_heads, d_model):
    """Build the Pallas param tree: fused QKV/KV weights, scale baked into Q."""
    scale = 1.0 / math.sqrt(d_model // n_heads)

    def fuse_attn(p):
        wq = p["wq"] * scale
        bq = p["bq"] * scale
        return {"wqkv": jnp.concatenate([wq, p["wk"], p["wv"]], axis=1),
                "bqkv": jnp.concatenate([bq, p["bk"], p["bv"]], axis=0),
                "wq": wq, "bq": bq,
                "wkv": jnp.concatenate([p["wk"], p["wv"]], axis=1),
                "bkv": jnp.concatenate([p["bk"], p["bv"]], axis=0),
                "wo": p["wo"], "bo": p["bo"]}

    def fuse_layer(lp, has_src):
        out = dict(lp)
        out["self_attn"] = fuse_attn(lp["self_attn"])
        if has_src:
            out["src_attn"] = fuse_attn(lp["src_attn"])
        return out

    enc = dict(params["encoder"])
    enc["layers"] = [fuse_layer(lp, False) for lp in params["encoder"]["layers"]]
    dec = dict(params["decoder"])
    dec["layers"] = [fuse_layer(lp, True) for lp in params["decoder"]["layers"]]
    return {"encoder": enc, "decoder": dec}


# ----------------------------------------------------------------------------
if __name__ == "__main__":
    B, D_MODEL, N_POINTS = 2, 32, 16       # batch, n_emb_dims, num points
    N_HEADS, D_FF, N_BLOCKS = 4, 64, 1     # heads, n_ff_dims, n_blocks

    key = jax.random.PRNGKey(0)
    k_src, k_tgt, k_par, k_ln = jax.random.split(key, 4)
    src = jax.random.normal(k_src, (B, D_MODEL, N_POINTS), dtype=jnp.float32)
    tgt = jax.random.normal(k_tgt, (B, D_MODEL, N_POINTS), dtype=jnp.float32)
    params = init_params(k_par, D_MODEL, D_FF, N_BLOCKS)
    params_fused = fuse_params(params, N_HEADS, D_MODEL)   # fused once, outside jit

    # (1) Tight unit check of the standalone LayerNorm kernel (no matmuls, f32).
    x_ln = jax.random.normal(k_ln, (B, N_POINTS, D_MODEL), dtype=jnp.float32)
    gamma = params["encoder"]["norm_g"]
    beta = params["encoder"]["norm_b"]
    ln_out = jax.block_until_ready(layer_norm_pallas(x_ln, gamma, beta))
    ln_ref = layer_norm_ref(x_ln, gamma, beta)
    assert jnp.allclose(ln_out, ln_ref, atol=1e-5, rtol=1e-5), "layernorm mismatch"

    # (2) Full Transformer forward with the Pallas kernels (fused path).
    run_pallas = jax.jit(functools.partial(
        transformer_forward_pallas, n_heads=N_HEADS))
    src_emb, tgt_emb = run_pallas(src, tgt, params_fused)
    src_emb = jax.block_until_ready(src_emb)
    tgt_emb = jax.block_until_ready(tgt_emb)
    assert src_emb.shape == (B, D_MODEL, N_POINTS)
    assert tgt_emb.shape == (B, D_MODEL, N_POINTS)

    # (3) End-to-end sanity check against the pure-f32 JAX reference.  The
    #     Pallas path feeds bf16 operands to the MXU (per the perf review), so
    #     the tolerance is loose enough to absorb bf16-vs-f32 differences
    #     across ~15 chained matmuls while still catching wiring/shape bugs.
    run_ref = jax.jit(functools.partial(
        transformer_forward_ref, n_heads=N_HEADS))
    src_ref, tgt_ref = run_ref(src, tgt, params)
    assert jnp.allclose(src_emb, src_ref, atol=1e-1, rtol=1e-1), \
        "src_embedding mismatch"
    assert jnp.allclose(tgt_emb, tgt_ref, atol=1e-1, rtol=1e-1), \
        "tgt_embedding mismatch"

    print("KERNEL_OK")
</pallas_src>

<mosaic_0001>
module attributes {stable_mosaic.version = 11 : i64} {
  func.func @_layer_norm_kernel(%arg0: i32, %arg1: memref<16x32xf32, #tpu.memory_space<vmem>>, %arg2: memref<1x32xf32, #tpu.memory_space<vmem>>, %arg3: memref<1x32xf32, #tpu.memory_space<vmem>>, %arg4: memref<16x32xf32, #tpu.memory_space<vmem>>) attributes {dimension_semantics = [#tpu.dimension_semantics<parallel>], iteration_bounds = array<i64: 2>, scalar_prefetch = 0 : i64, scratch_operands = 0 : i64, tpu.core_type = #tpu.core_type<tc>, window_params = [{transform_indices = @transform_0, window_bounds = array<i64: 16, 32>}, {pipeline_mode = #tpu.pipeline_mode<synchronous>, transform_indices = @transform_1, window_bounds = array<i64: 1, 32>}, {pipeline_mode = #tpu.pipeline_mode<synchronous>, transform_indices = @transform_2, window_bounds = array<i64: 1, 32>}, {transform_indices = @transform_3, window_bounds = array<i64: 16, 32>}]} {
    %c0 = arith.constant 0 : index
    %c0_0 = arith.constant 0 : index
    %0 = vector.load %arg1[%c0, %c0_0] : memref<16x32xf32, #tpu.memory_space<vmem>>, vector<16x32xf32>
    %cst = arith.constant dense<0.000000e+00> : vector<16xf32>
    %1 = vector.multi_reduction <add>, %0, %cst [1] : vector<16x32xf32> to vector<16xf32>
    %2 = vector.shape_cast %1 : vector<16xf32> to vector<16x1xf32>
    %cst_1 = arith.constant 3.125000e-02 : f32
    %3 = vector.broadcast %cst_1 : f32 to vector<16x1xf32>
    %4 = arith.mulf %2, %3 : vector<16x1xf32>
    %5 = vector.broadcast %4 : vector<16x1xf32> to vector<16x32xf32>
    %6 = arith.subf %0, %5 : vector<16x32xf32>
    %7 = arith.mulf %6, %6 : vector<16x32xf32>
    %cst_2 = arith.constant dense<0.000000e+00> : vector<16xf32>
    %8 = vector.multi_reduction <add>, %7, %cst_2 [1] : vector<16x32xf32> to vector<16xf32>
    %9 = vector.shape_cast %8 : vector<16xf32> to vector<16x1xf32>
    %cst_3 = arith.constant 0.0322580636 : f32
    %10 = vector.broadcast %cst_3 : f32 to vector<16x1xf32>
    %11 = arith.mulf %9, %10 : vector<16x1xf32>
    %12 = math.sqrt %11 : vector<16x1xf32>
    %cst_4 = arith.constant 9.99999997E-7 : f32
    %13 = vector.broadcast %cst_4 : f32 to vector<16x1xf32>
    %14 = arith.addf %12, %13 : vector<16x1xf32>
    %15 = tpu.reciprocal %14 : vector<16x1xf32> -> vector<16x1xf32>
    %16 = vector.broadcast %15 : vector<16x1xf32> to vector<16x32xf32>
    %17 = arith.mulf %6, %16 : vector<16x32xf32>
    %c0_5 = arith.constant 0 : index
    %c0_6 = arith.constant 0 : index
    %18 = vector.load %arg2[%c0_5, %c0_6] : memref<1x32xf32, #tpu.memory_space<vmem>>, vector<1x32xf32>
    %19 = vector.broadcast %18 : vector<1x32xf32> to vector<16x32xf32>
    %20 = arith.mulf %17, %19 : vector<16x32xf32>
    %c0_7 = arith.constant 0 : index
    %c0_8 = arith.constant 0 : index
    %21 = vector.load %arg3[%c0_7, %c0_8] : memref<1x32xf32, #tpu.memory_space<vmem>>, vector<1x32xf32>
    %22 = vector.broadcast %21 : vector<1x32xf32> to vector<16x32xf32>
    %23 = arith.addf %20, %22 : vector<16x32xf32>
    %c0_9 = arith.constant 0 : index
    %c0_10 = arith.constant 0 : index
    %24 = vector.load %arg4[%c0_9, %c0_10] : memref<16x32xf32, #tpu.memory_space<vmem>>, vector<16x32xf32>
    tpu.vector_store %arg4[%c0_9, %c0_10], %23 {strides = array<i32>} : memref<16x32xf32, #tpu.memory_space<vmem>>, vector<16x32xf32>,
    return
  }
  func.func @transform_0(%arg0: i32) -> (i32, i32) {
    %c0_i32 = arith.constant 0 : i32
    %c0_i32_0 = arith.constant 0 : i32
    return %arg0, %c0_i32 : i32, i32
  }
  func.func @transform_1(%arg0: i32) -> (i32, i32) {
    %c0_i32 = arith.constant 0 : i32
    %c0_i32_0 = arith.constant 0 : i32
    %c0_i32_1 = arith.constant 0 : i32
    return %c0_i32, %c0_i32_0 : i32, i32
  }
  func.func @transform_2(%arg0: i32) -> (i32, i32) {
    %c0_i32 = arith.constant 0 : i32
    %c0_i32_0 = arith.constant 0 : i32
    %c0_i32_1 = arith.constant 0 : i32
    return %c0_i32, %c0_i32_0 : i32, i32
  }
  func.func @transform_3(%arg0: i32) -> (i32, i32) {
    %c0_i32 = arith.constant 0 : i32
    %c0_i32_0 = arith.constant 0 : i32
    return %arg0, %c0_i32 : i32, i32
  }
}

</mosaic_0001>

<bundles_post_ra>
// kernel: tpu_custom_call.1
= control target key start
LH: loop header
LB: loop body
LE: loop exit
PB: predicated region body
PF: predicated region fallthrough
CT: control target
= control target key end

     0   :  { %8 = vsyncpa [#allocation3], 0  ;;  %s719_s0 = inlined_call_operand.hbm [shape: f32[32,32], index: 0, kind: input, shape index: {}]   ;;  %s720_s1 = inlined_call_operand.vmem [shape: f32[1,32], index: 1, kind: input, shape index: {}]   ;;  %s721_s2 = inlined_call_operand.vmem [shape: f32[1,32], index: 2, kind: input, shape index: {}]   ;;  %s722_s3 = inlined_call_operand.hbm [shape: f32[32,32], index: 3, kind: output, shape index: {}]  }
   0x1   :  { %10 = vsyncpa [#allocation3 + $0x1], 0 }
   0x2   :  { %11 = vsyncpa [#allocation4], 0 }
   0x3   :  { %13 = vsyncpa [#allocation4 + $0x1], 0  ;;  %s541_s12 = smov 0   ;;  %s543_s13 = smov 0  }
   0x4   :  { %s545_s14 = smov 0   ;;  %s547_s15 = smov 0  }
   0x5 LB: > { %s562_s16 = sadd.s32 4294967295, %s513_s15   ;;  %s341_s17 = sadd.s32 4294967294, %s513_s15   ;;  %s513_s15 = sphi %s547_s15, %s735_s15   ;;  %s509_s14 = sphi %s545_s14, %s734_s14   ;;  %s505_s13 = sphi %s543_s13, %s733_s13   ;;  %s501_s12 = sphi %s541_s12, %s732_s12  }
   0x6   : > { %s566_s18 = sadd.s32 1, %s513_s15   ;;  %s26_s19 = sadd.s32 1, %s509_s14 }
   0x7   : > { %s23_s20 = ssub.s32 %s513_s15, %s566_s18  ;;  %p33_p0 = scmp.ne.s32.totalorder %s509_s14, %s505_s13 }
   0x8   : > { %p24_p1 = scmp.eq.s32.totalorder %s23_s20, 0  ;;  %p34_p2 = scmp.eq.s32.totalorder %s513_s15, 0 }
   0x9   : > { %p39_p3 = scmp.ne.s32.totalorder %s505_s13, %s501_s12  ;;  %p40_p4 = scmp.eq.s32.totalorder %s562_s16, 0 }
   0xa   : > { %s578_s21 = scalar_select %p24_p1, %s509_s14, %s26_s19  }
   0xb   : > { %p580_p5 = por %p34_p2, %p33_p0  ;;  %p584_p6 = por %p40_p4, %p39_p3 }
   0xc   : > { %p105_p7 = scmp.eq.s32.totalorder %s562_s16, 1  ;;  %p111_p8 = scmp.eq.s32.totalorder %s341_s17, 1 }
   0xd   : > { %p371_p10 = scmp.lt.s32.totalorder %s513_s15, 2  ;;  %s137_s26 = sand.u32 1, %s509_s14  }
   0xe   : > { %p591_p11 = por %p105_p7, %p33_p0  ;;  %p595_p12 = por %p111_p8, %p39_p3 }
   0xf   : > { %s357_s27 = sshll.u32 %s513_s15, 8  ;;  %s344_s28 = sshll.u32 %s137_s26, 4 }
  0x10   : > { %s726_s24 = scalar_select %p591_p11, 1, 0 }
  0x11   : > { %s727_s25 = scalar_select %p595_p12, 1, 0 }
  0x12   : > { %s604_s4 = scalar_lea.hbm %s719_s0, %s357_s27  ;;  %s141_s5 = scalar_lea.vmem [#allocation2], %s344_s28 }
  0x13   : > { %s148_s6 = sshll.u32 %s141_s5, 4  ;;  %p608_p13 = pnand %p371_p10, %p580_p5  ;;  %s612_s6 = int_to_ptr.vmem [resolvable:$true] %s148_s6 }
  0x14   : > { %s614_s8 = scalar_lea.sflag [#allocation3], %s137_s26  ;;  %s417_s9 = scalar_lea.hbm %s604_s4, 256 }
  0x15   : > { %p418_p0 = scmp.ne.s32.totalorder %s604_s4, %s417_s9  ;;  %p419_p1 = pneg %p608_p13 }
  0x16   : > { %s422_s17 = scalar_lea.hbm %s719_s0, 512  ;;  %p423_p4 = scmp.lt.u32.totalorder %s604_s4, %s719_s0 }
  0x17   : > { %p420_p2 = pnand %p419_p1, %p418_p0  ;;  %p424_p5 = scmp.lt.u32.totalorder %s422_s17, %s417_s9 }
  0x18   : > { %p426_p8 = scmp.lt.u32.totalorder %s417_s9, %s604_s4 }
  0x19   : > { %p421_p3 = pneg %p420_p2  ;;  %p425_p7 = por %p424_p5, %p423_p4 }
  0x1b   : > { %p427_p10 = por %p426_p8, %p425_p7 }
  0x1d   : > { %p428_p9 = pnand %p427_p10, %p421_p3 }
  0x1f   : > { %431 = shalt.err (!%p428_p9)
}
  0x20   : > { %s432_s22 = scalar_lea.vmem %s612_s6, 256  ;;  %s515_s26 = smov [#allocation2]  }
  0x21   : > { %p433_p0 = scmp.ne.s32.totalorder %s612_s6, %s432_s22  ;;  %s437_s27 = sshll.u32 %s515_s26, 4  ;;  %s438_s27 = int_to_ptr.vmem [resolvable:$false] %s437_s27 }
  0x22   : > { %s439_s28 = scalar_lea.vmem %s438_s27, 512  ;;  %p440_p11 = scmp.lt.s32.totalorder %s612_s6, %s438_s27 }
  0x23   : > { %p435_p2 = pnand %p433_p0, %p419_p1  ;;  %p441_p4 = scmp.lt.s32.totalorder %s439_s28, %s432_s22 }
  0x25   : > { %p436_p12 = pneg %p435_p2  ;;  %p442_p5 = por %p441_p4, %p440_p11 }
  0x27   : > { %p443_p7 = pnand %p442_p5, %p436_p12 }
  0x29   : > { %446 = shalt.err (!%p443_p7)
}
  0x2a   : > { %s516_s29 = smov 128   ;;  %s517_s30 = smov 8  }
  0x2b   : > { %366 = dma.hbm_to_vmem [thread:$0]  (!%p608_p13), %s604_s4, 256, %s612_s6, %s614_s8, %s516_s29, %s516_s29, %s517_s30  }
  0x2c   : > { %p347_p9 = scmp.ge.s32.totalorder %s513_s15, 1  ;;  %p156_p1 = scmp.lt.s32.totalorder %s513_s15, 3 }
  0x2e   : > { %p157_p3 = pnand %p347_p9, %p156_p1 }
  0x2f   : > { %s645_s5 = sand.u32 (!%p157_p3), 1, %s505_s13  }
  0x30   : > { %160 = sbr.rel (%p157_p3) target bundleno = 404 (0x194), region = 32  ;;  %s348_s9 = sshll.u32 (!%p157_p3), %s645_s5, 4 }
  0x31   : > { %s163_s10 = scalar_lea.sflag (!%p157_p3), [#allocation3], %s645_s5  ;;  %s166_s11 = scalar_lea.vmem (!%p157_p3), [#allocation2], %s348_s9 }
  0x37   : > { %492 = dma.done.wait (%p584_p6), %s163_s10, 256  }
  0x38   : > { %494 = vsyncadd (%p584_p6), %s163_s10, 4294967040  ;;  %vm193_vm0 = vcmask 261120   ;;  %v191_v0 = vld [vmem:[%s166_s11] sm:$0xff]  ;;  %v192_v1 = vld [vmem:[%s166_s11 + $0x8] sm:$0xff]  ;;  %s358_s8 = sshll.u32 %s562_s16, 8  ;;  %s188_s17 = scalar_lea.vmem [#allocation5], %s348_s9 }
  0x39   : > { %v194_v2 = vsel %vm193_vm0, %v191_v0, 0.0  ;;  %v197_v3 = vsel %vm193_vm0, %v192_v1, 0.0  ;;  %v350_v31 = vld [vmem:[%s720_s1] ss:$0 sm:$0xff]  ;;  %s268_s19 = sshll.u32 %s188_s17, 4  ;;  %s672_s26 = scalar_lea.hbm %s722_s3, %s358_s8  ;;  %s674_s19 = int_to_ptr.vmem [resolvable:$true] %s268_s19 }
  0x3a   : > { %195 = vadd.xlane.f32.xlu0 %v194_v2  ;;  %v351_v33 = vld [vmem:[%s721_s2] ss:$0 sm:$0xff]  ;;  %s255_s16 = scalar_lea.sflag [#allocation4], %s645_s5  ;;  %s447_s27 = scalar_lea.vmem %s674_s19, 256 }
  0x3b   : > { %p448_p6 = scmp.ne.s32.totalorder %s674_s19, %s447_s27  ;;  %p729_p11 = scmp.ne.s32.totalorder %s726_s24, 0 }
  0x3c   : > { %s518_s28 = smov [#allocation5]  }
  0x3d   : > { %p449_p12 = pnand %p448_p6, %p729_p11  ;;  %s451_s29 = sshll.u32 %s518_s28, 4  ;;  %s452_s29 = int_to_ptr.vmem [resolvable:$false] %s451_s29 }
  0x3e   : > { %198 = vadd.xlane.f32.xlu0 %v197_v3  ;;  %s453_s30 = scalar_lea.vmem %s452_s29, 512  ;;  %p454_p8 = scmp.lt.s32.totalorder %s674_s19, %s452_s29 }
  0x3f   : > { %p450_p13 = pneg %p449_p12  ;;  %p455_p10 = scmp.lt.s32.totalorder %s453_s30, %s447_s27 }
  0x41   : > { %p456_p0 = por %p455_p10, %p454_p8 }
  0x43   : > { %p457_p2 = pnand %p456_p0, %p450_p13 }
  0xc7   : > { %v196_v4 = vpop.xlane.xlu0 %195 }
  0xc8   : > { %v200_v5 = vmul.f32 0.03125, %v196_v4 }
  0xca   : > { %v202_v6 = vsub.f32 %v191_v0, %v200_v5 }
  0xcb   : > { %v199_v7 = vpop.xlane.xlu0 %198 }
  0xcc   : > { %v201_v8 = vmul.f32 0.03125, %v199_v7  ;;  %v204_v9 = vmul.f32 %v202_v6, %v202_v6 }
  0xce   : > { %v203_v10 = vsub.f32 %v192_v1, %v201_v8  ;;  %v206_v11 = vsel %vm193_vm0, %v204_v9, 0.0 }
  0xcf   : > { %207 = vadd.xlane.f32.xlu1 %v206_v11 }
  0xd0   : > { %v205_v12 = vmul.f32 %v203_v10, %v203_v10 }
  0xd2   : > { %v209_v13 = vsel %vm193_vm0, %v205_v12, 0.0 }
  0xd3   : > { %210 = vadd.xlane.f32.xlu1 %v209_v13 }
 0x15c   : > { %v208_v14 = vpop.xlane.xlu1 %207 }
 0x15d   : > { %v212_v15 = vmul.f32 0.032258064, %v208_v14 }
 0x15f   : > { %409 = vrsqrt.f32 %v212_v15  ;;  %vm216_vm1 = vcmp.eq.f32.partialorder %v212_v15, inf  ;;  %v219_v20 = vand.u32 2147483648, %v212_v15  ;;  %vm218_vm2 = vcmp.eq.f32.partialorder %v212_v15, 0.0 }
 0x160   : > { %v211_v16 = vpop.xlane.xlu1 %210 }
 0x161   : > { %v213_v17 = vmul.f32 0.032258064, %v211_v16 }
 0x163   : > { %411 = vrsqrt.f32 %v213_v17  ;;  %vm223_vm3 = vcmp.eq.f32.partialorder %v213_v17, inf  ;;  %v226_v26 = vand.u32 2147483648, %v213_v17  ;;  %vm225_vm4 = vcmp.eq.f32.partialorder %v213_v17, 0.0 }
 0x169   : > { %v410_v18 = vpop.eup %409 }
 0x16a   : > { %v215_v19 = vmul.f32 %v410_v18, %v212_v15 }
 0x16c   : > { %v217_v21 = vsel %vm216_vm1, %v212_v15, %v215_v19 }
 0x16d   : > { %v412_v22 = vpop.eup %411  ;;  %v220_v23 = vsel %vm218_vm2, %v219_v20, %v217_v21 }
 0x16e   : > { %v228_v24 = vadd.f32 1e-06, %v220_v23  ;;  %v222_v25 = vmul.f32 %v412_v22, %v213_v17 }
 0x170   : > { %413 = vrcp.f32 %v228_v24  ;;  %v224_v27 = vsel %vm223_vm3, %v213_v17, %v222_v25 }
 0x171   : > { %v227_v28 = vsel %vm225_vm4, %v226_v26, %v224_v27 }
 0x172   : > { %v229_v29 = vadd.f32 1e-06, %v227_v28 }
 0x174   : > { %415 = vrcp.f32 %v229_v29 }
 0x17a   : > { %v414_v30 = vpop.eup %413 }
 0x17b   : > { %v232_v32 = vmul.f32 %v414_v30, %v202_v6 }
 0x17d   : > { %v241_v34 = vmul.f32 %v350_v31, %v232_v32 }
 0x17e   : > { %v416_v35 = vpop.eup %415 }
 0x17f   : > { %v233_v36 = vmul.f32 %v416_v35, %v203_v10  ;;  %v250_v37 = vadd.f32 %v351_v33, %v241_v34 }
 0x181   : > { %v242_v38 = vmul.f32 %v350_v31, %v233_v36  ;;  %252 = vst.msk [vmem:[%s188_s17] sm:$0xff] %vm193_vm0, %v250_v37 }
 0x183   : > { %v251_v39 = vadd.f32 %v351_v33, %v242_v38 }
 0x185   : > { %253 = vst.msk [vmem:[%s188_s17 + $0x8] sm:$0xff] %vm193_vm0, %v251_v39 }
 0x186   : > { %460 = shalt.err (!%p457_p2)
}
 0x187   : > { %s461_s9 = scalar_lea.hbm %s672_s26, 256  ;;  %s465_s23 = scalar_lea.hbm %s722_s3, 512 }
 0x188   : > { %p462_p4 = scmp.ne.s32.totalorder %s672_s26, %s461_s9  ;;  %p466_p9 = scmp.lt.u32.totalorder %s672_s26, %s722_s3 }
 0x189   : > { %p467_p1 = scmp.lt.u32.totalorder %s465_s23, %s461_s9  ;;  %p469_p6 = scmp.lt.u32.totalorder %s461_s9, %s672_s26 }
 0x18a   : > { %p463_p5 = pnand %p462_p4, %p729_p11 }
 0x18b   : > { %p468_p3 = por %p467_p1, %p466_p9 }
 0x18c   : > { %p464_p7 = pneg %p463_p5 }
 0x18d   : > { %p470_p12 = por %p469_p6, %p468_p3 }
 0x18f   : > { %p471_p13 = pnand %p470_p12, %p464_p7 }
 0x191   : > { %474 = shalt.err (!%p471_p13)
}
 0x192   : > { %s519_s7 = smov 128   ;;  %s520_s8 = smov 8  }
 0x193   : > { %361 = dma.vmem_to_hbm [thread:$0]  (%p729_p11), %s674_s19, 256, %s672_s26, %s255_s16, %s519_s7, %s519_s7, %s520_s8  }
 0x194 PF: > { %s283_s17 = sand.u32 1, %s501_s12   ;;  %p730_p8 = scmp.ne.s32.totalorder %s727_s25, 0 }
 0x195   : > { %p731_p10 = scmp.ge.s32.totalorder %s513_s15, 2  ;;  %s284_s20 = scalar_lea.sflag [#allocation4], %s283_s17 }
 0x197   : > { %p368_p0 = pnand %p731_p10, %p730_p8 }
 0x199   : > { %496 = dma.done.wait (!%p368_p0), %s284_s20, 256  }
 0x19a   : > { %498 = vsyncadd (!%p368_p0), %s284_s20, 4294967040  ;;  %p16_p2 = scmp.ge.s32.totalorder %s566_s18, 4   ;;  %s732_s12 = smov %s505_s13 }
 0x19b   : > { %s733_s13 = smov %s509_s14  ;;  %s734_s14 = smov %s578_s21 }
 0x19c   : > { %s735_s15 = smov %s566_s18  ;;  %18 = sbr.rel (!%p16_p2) target bundleno = 5 (0x5), region = 77 }
 0x1a3   :  { %289 = vsyncpa [#allocation3], 1 }
 0x1a4   :  { %291 = vsyncpa [#allocation3 + $0x1], 1 }
 0x1a5   :  { %292 = vsyncpa [#allocation4], 1 }
 0x1a6   :  { %294 = vsyncpa [#allocation4 + $0x1], 1 }

</bundles_post_ra>
